<compile_context>
chip_gen: v5e
topology: v5e:2x2
jax: 0.10.0
libtpu: 0.0.40
codegen_flags: <defaults>
</compile_context>

<pallas_src>
import jax
import jax.numpy as jnp
from jax.experimental import pallas as pl
from jax.experimental.pallas import tpu as pltpu


def _round_up(x: int, m: int) -> int:
    return ((x + m - 1) // m) * m


def _largest_aligned_divisor(n: int, align: int, cap: int) -> int:
    """Largest d with d | n, d % align == 0, d <= cap (n assumed % align == 0)."""
    best = align
    d = align
    limit = min(n, cap)
    while d <= limit:
        if n % d == 0:
            best = d
        d += align
    return best


def rbf_kernel(x_ref, w_ref, xsq_ref, wsq_ref, o_ref, acc_ref):
    # x_ref: (tm, tk), w_ref: (tk, tn), xsq_ref: (tm, 1) f32, wsq_ref: (1, tn) f32
    # o_ref: (tm, tn), acc_ref: (tm, tn) f32 scratch
    k = pl.program_id(2)

    partial = jnp.dot(x_ref[...], w_ref[...], preferred_element_type=jnp.float32)

    @pl.when(k == 0)
    def _first():
        # Write directly: saves a zero-store + read-back per output tile.
        acc_ref[...] = partial

    @pl.when(k != 0)
    def _accumulate():
        acc_ref[...] += partial

    @pl.when(k == pl.num_programs(2) - 1)
    def _finalize():
        # Single epilogue combine + broadcast; clamp to 0 against f32
        # cancellation when x_b ~= w_:o with large norms.
        dist = xsq_ref[...] - 2.0 * acc_ref[...] + wsq_ref[...]
        o_ref[...] = jnp.maximum(dist, 0.0).astype(o_ref.dtype)


def radial_basis_function(x, weight, *, tm_cap=512, tn_cap=512, tk_cap=512,
                          mxu_dtype=None, out_dtype=None):
    """x: (B, I); weight: (1, I, O) -> (B, O), matching the PyTorch forward."""
    w = weight[0]                     # (I, O) — glue squeeze in plain JAX
    B, I = x.shape
    I2, O = w.shape
    assert I2 == I, "weight in_features must match x"

    out_dtype = x.dtype if out_dtype is None else out_dtype

    # Pad only to hardware alignment (sublane 8 / lane 128), not tile multiples.
    Bp = _round_up(B, 8)
    Ip = _round_up(I, 128)
    Op = _round_up(O, 128)

    # Zero padding is exact: zero rows/cols along I contribute 0 to both the
    # norms and the dot product; padded O columns are sliced off below.
    xp = jnp.pad(x, ((0, Bp - B), (0, Ip - I)))
    wp = jnp.pad(w, ((0, Ip - I), (0, Op - O)))

    # Norms hoisted out of the kernel (always f32, computed pre-cast).
    xsq = jnp.sum(xp.astype(jnp.float32) ** 2, axis=1, keepdims=True)  # (Bp, 1)
    wsq = jnp.sum(wp.astype(jnp.float32) ** 2, axis=0, keepdims=True)  # (1, Op)

    if mxu_dtype is not None:
        # Opt-in fast path: narrower MXU operands, f32 accumulation/norms.
        xp = xp.astype(mxu_dtype)
        wp = wp.astype(mxu_dtype)

    # Tiles = largest aligned divisors of the padded dims, capped for VMEM.
    tm = _largest_aligned_divisor(Bp, 8, tm_cap)
    tn = _largest_aligned_divisor(Op, 128, tn_cap)
    tk = _largest_aligned_divisor(Ip, 128, tk_cap)

    # Guarantee >= 2 parallel tiles when possible so v7x's second TensorCore
    # isn't idle (cheap on single-TC chips: only small x gets re-read).
    if (Bp // tm) * (Op // tn) == 1:
        if Op // 128 >= 2:
            tn = _largest_aligned_divisor(Op, 128, Op // 2)
        elif Bp // 8 >= 2:
            tm = _largest_aligned_divisor(Bp, 8, Bp // 2)

    grid = (Bp // tm, Op // tn, Ip // tk)   # reduction axis last

    n_i, n_j = grid[0], grid[1]
    op_itemsize = jnp.dtype(xp.dtype).itemsize
    out_itemsize = jnp.dtype(out_dtype).itemsize
    cost = pl.CostEstimate(
        flops=2 * Bp * Ip * Op + 3 * Bp * Op,
        transcendentals=0,
        bytes_accessed=(op_itemsize * (Bp * Ip * n_j + Ip * Op * n_i)
                        + out_itemsize * Bp * Op
                        + 4 * (Bp + Op)),
    )

    out = pl.pallas_call(
        rbf_kernel,
        out_shape=jax.ShapeDtypeStruct((Bp, Op), out_dtype),
        grid_spec=pltpu.PrefetchScalarGridSpec(
            num_scalar_prefetch=0,
            grid=grid,
            in_specs=[
                pl.BlockSpec((tm, tk), lambda i, j, k: (i, k)),
                pl.BlockSpec((tk, tn), lambda i, j, k: (k, j)),
                pl.BlockSpec((tm, 1), lambda i, j, k: (i, 0)),
                pl.BlockSpec((1, tn), lambda i, j, k: (0, j)),
            ],
            out_specs=pl.BlockSpec((tm, tn), lambda i, j, k: (i, j)),
            scratch_shapes=[
                pltpu.VMEM((tm, tn), jnp.float32),   # matmul accumulator
            ],
        ),
        compiler_params=pltpu.CompilerParams(
            dimension_semantics=("parallel", "parallel", "arbitrary"),
            vmem_limit_bytes=32 * 1024 * 1024,
        ),
        cost_estimate=cost,
    )(xp, wp, xsq, wsq)

    return out[:B, :O]


if __name__ == "__main__":
    key = jax.random.PRNGKey(0)
    k_x, k_w = jax.random.split(key)

    batch, in_features, out_features = 8, 32, 16

    x = jax.random.normal(k_x, (batch, in_features), dtype=jnp.float32)
    # Deterministic stand-in for torch.randn(1, in_features, out_features).
    weight = jax.random.normal(
        k_w, (1, in_features, out_features), dtype=jnp.float32
    )

    out = radial_basis_function(x, weight)
    out = jax.block_until_ready(out)

    # Reference (direct broadcast/reduce, matches the PyTorch forward).
    ref = jnp.sum((x[:, :, None] - weight) ** 2, axis=1)

    assert out.shape == (batch, out_features)
    assert jnp.allclose(out, ref, atol=1e-4, rtol=1e-4)

    print("KERNEL_OK")
</pallas_src>

<mosaic_0001>
module attributes {stable_mosaic.version = 11 : i64} {
  func.func @rbf_kernel(%arg0: i32, %arg1: i32, %arg2: i32, %arg3: memref<8x128xf32, #tpu.memory_space<vmem>>, %arg4: memref<128x128xf32, #tpu.memory_space<vmem>>, %arg5: memref<8x1xf32, #tpu.memory_space<vmem>>, %arg6: memref<1x128xf32, #tpu.memory_space<vmem>>, %arg7: memref<8x128xf32, #tpu.memory_space<vmem>>, %arg8: memref<8x128xf32, #tpu.memory_space<vmem>>) attributes {dimension_semantics = [#tpu.dimension_semantics<parallel>, #tpu.dimension_semantics<parallel>, #tpu.dimension_semantics<arbitrary>], iteration_bounds = array<i64: 1, 1, 1>, scalar_prefetch = 0 : i64, scratch_operands = 1 : i64, tpu.core_type = #tpu.core_type<tc>, window_params = [{transform_indices = @transform_0, window_bounds = array<i64: 8, 128>}, {transform_indices = @transform_1, window_bounds = array<i64: 128, 128>}, {transform_indices = @transform_2, window_bounds = array<i64: 8, 1>}, {transform_indices = @transform_3, window_bounds = array<i64: 1, 128>}, {transform_indices = @transform_4, window_bounds = array<i64: 8, 128>}]} {
    %c0 = arith.constant 0 : index
    %c0_0 = arith.constant 0 : index
    %0 = vector.load %arg3[%c0, %c0_0] : memref<8x128xf32, #tpu.memory_space<vmem>>, vector<8x128xf32>
    %c0_1 = arith.constant 0 : index
    %c0_2 = arith.constant 0 : index
    %1 = vector.load %arg4[%c0_1, %c0_2] : memref<128x128xf32, #tpu.memory_space<vmem>>, vector<128x128xf32>
    %cst = arith.constant dense<0.000000e+00> : vector<8x128xf32>
    %2 = tpu.matmul %0, %1, %cst {dimension_numbers = #tpu.dot_dimension_numbers<[1], [0], [0], [1], [0, 0, 1, 1], [], []>} : vector<8x128xf32>, vector<128x128xf32>, vector<8x128xf32> -> vector<8x128xf32>
    %c0_i32 = arith.constant 0 : i32
    %3 = arith.cmpi eq, %arg2, %c0_i32 : i32
    %4 = arith.extui %3 : i1 to i32
    %c0_i32_3 = arith.constant 0 : i32
    %5 = arith.cmpi ne, %4, %c0_i32_3 : i32
    scf.if %5 {
      %c0_8 = arith.constant 0 : index
      %c0_9 = arith.constant 0 : index
      %12 = vector.load %arg8[%c0_8, %c0_9] : memref<8x128xf32, #tpu.memory_space<vmem>>, vector<8x128xf32>
      tpu.vector_store %arg8[%c0_8, %c0_9], %2 {strides = array<i32>} : memref<8x128xf32, #tpu.memory_space<vmem>>, vector<8x128xf32>,
    } else {
    }
    %c0_i32_4 = arith.constant 0 : i32
    %6 = arith.cmpi ne, %arg2, %c0_i32_4 : i32
    %7 = arith.extui %6 : i1 to i32
    %c0_i32_5 = arith.constant 0 : i32
    %8 = arith.cmpi ne, %7, %c0_i32_5 : i32
    scf.if %8 {
      %c0_8 = arith.constant 0 : index
      %c0_9 = arith.constant 0 : index
      %12 = vector.load %arg8[%c0_8, %c0_9] : memref<8x128xf32, #tpu.memory_space<vmem>>, vector<8x128xf32>
      %13 = arith.addf %12, %2 : vector<8x128xf32>
      %c0_10 = arith.constant 0 : index
      %c0_11 = arith.constant 0 : index
      %14 = vector.load %arg8[%c0_10, %c0_11] : memref<8x128xf32, #tpu.memory_space<vmem>>, vector<8x128xf32>
      tpu.vector_store %arg8[%c0_10, %c0_11], %13 {strides = array<i32>} : memref<8x128xf32, #tpu.memory_space<vmem>>, vector<8x128xf32>,
    } else {
    }
    %c0_i32_6 = arith.constant 0 : i32
    %9 = arith.cmpi eq, %arg2, %c0_i32_6 : i32
    %10 = arith.extui %9 : i1 to i32
    %c0_i32_7 = arith.constant 0 : i32
    %11 = arith.cmpi ne, %10, %c0_i32_7 : i32
    scf.if %11 {
      %c0_8 = arith.constant 0 : index
      %c0_9 = arith.constant 0 : index
      %12 = vector.load %arg5[%c0_8, %c0_9] : memref<8x1xf32, #tpu.memory_space<vmem>>, vector<8x1xf32>
      %c0_10 = arith.constant 0 : index
      %c0_11 = arith.constant 0 : index
      %13 = vector.load %arg8[%c0_10, %c0_11] : memref<8x128xf32, #tpu.memory_space<vmem>>, vector<8x128xf32>
      %cst_12 = arith.constant 2.000000e+00 : f32
      %14 = vector.broadcast %cst_12 : f32 to vector<8x128xf32>
      %15 = arith.mulf %14, %13 : vector<8x128xf32>
      %16 = vector.broadcast %12 : vector<8x1xf32> to vector<8x128xf32>
      %17 = arith.subf %16, %15 : vector<8x128xf32>
      %c0_13 = arith.constant 0 : index
      %c0_14 = arith.constant 0 : index
      %18 = vector.load %arg6[%c0_13, %c0_14] : memref<1x128xf32, #tpu.memory_space<vmem>>, vector<1x128xf32>
      %19 = vector.broadcast %18 : vector<1x128xf32> to vector<8x128xf32>
      %20 = arith.addf %17, %19 : vector<8x128xf32>
      %cst_15 = arith.constant 0.000000e+00 : f32
      %21 = vector.broadcast %cst_15 : f32 to vector<8x128xf32>
      %22 = arith.maximumf %20, %21 : vector<8x128xf32>
      %c0_16 = arith.constant 0 : index
      %c0_17 = arith.constant 0 : index
      %23 = vector.load %arg7[%c0_16, %c0_17] : memref<8x128xf32, #tpu.memory_space<vmem>>, vector<8x128xf32>
      tpu.vector_store %arg7[%c0_16, %c0_17], %22 {strides = array<i32>} : memref<8x128xf32, #tpu.memory_space<vmem>>, vector<8x128xf32>,
    } else {
    }
    return
  }
  func.func @transform_0(%arg0: i32, %arg1: i32, %arg2: i32) -> (i32, i32) {
    %c0_i32 = arith.constant 0 : i32
    return %arg0, %arg2 : i32, i32
  }
  func.func @transform_1(%arg0: i32, %arg1: i32, %arg2: i32) -> (i32, i32) {
    %c0_i32 = arith.constant 0 : i32
    return %arg2, %arg1 : i32, i32
  }
  func.func @transform_2(%arg0: i32, %arg1: i32, %arg2: i32) -> (i32, i32) {
    %c0_i32 = arith.constant 0 : i32
    %c0_i32_0 = arith.constant 0 : i32
    return %arg0, %c0_i32 : i32, i32
  }
  func.func @transform_3(%arg0: i32, %arg1: i32, %arg2: i32) -> (i32, i32) {
    %c0_i32 = arith.constant 0 : i32
    %c0_i32_0 = arith.constant 0 : i32
    return %c0_i32, %arg1 : i32, i32
  }
  func.func @transform_4(%arg0: i32, %arg1: i32, %arg2: i32) -> (i32, i32) {
    %c0_i32 = arith.constant 0 : i32
    return %arg0, %arg1 : i32, i32
  }
}

</mosaic_0001>

<bundles_post_ra>
// kernel: tpu_custom_call.1
= control target key start
LH: loop header
LB: loop body
LE: loop exit
PB: predicated region body
PF: predicated region fallthrough
CT: control target
= control target key end

     0   :  { %9 = vsyncpa [#allocation4], 0  ;;  %s223_s0 = inlined_call_operand.vmem [shape: f32[8,128], index: 0, kind: input, shape index: {}]   ;;  %s224_s1 = inlined_call_operand.hbm [shape: f32[128,128], index: 1, kind: input, shape index: {}]   ;;  %s225_s2 = inlined_call_operand.vmem [shape: f32[8,1], index: 2, kind: input, shape index: {}]   ;;  %s226_s3 = inlined_call_operand.vmem [shape: f32[1,128], index: 3, kind: input, shape index: {}]   ;;  %s227_s4 = inlined_call_operand.hbm [shape: f32[8,128], index: 4, kind: output, shape index: {}]  }
   0x1   :  { %10 = vsyncpa [#allocation5], 0  ;;  %s17_s17 = sshll.u32 %s224_s1, 4  ;;  %s178_s18 = smov [#allocation3]   ;;  %s18_s17 = int_to_ptr.hbm [resolvable:$true] %s17_s17 }
   0x2   :  { %s19_s19 = sshll.u32 %s178_s18, 4  ;;  %s179_s20 = smov 128   ;;  %s20_s19 = int_to_ptr.vmem [resolvable:$true] %s19_s19 }
   0x3   :  { %s180_s21 = smov 8  }
   0x4   :  { %25 = dma.hbm_to_vmem [thread:$0]  %s18_s17, 2048, %s20_s19, [#allocation4], %s179_s20, %s179_s20, %s180_s21  }
   0x5   :  { %174 = dma.done.wait [#allocation4], 2048  }
   0x6   :  { %175 = vsyncadd [#allocation4], 4294965248  ;;  %v50_v0 = vld [vmem:[#allocation3 + $0x78] sm:$0xff]  ;;  %v49_v1 = vld [vmem:[#allocation3 + $0x70] sm:$0xff]  ;;  %v181_v2 = vmov 0   ;;  %s182_s26 = smov [#allocation6]  }
   0x7   :  { %51 = vmatpush.msra.mxu0 %v50_v0  ;;  %124 = vset.pattern.permute.xlu0 %v181_v2  ;;  %v48_v3 = vld [vmem:[#allocation3 + $0x68] sm:$0xff]  ;;  %v47_v4 = vld [vmem:[#allocation3 + $0x60] sm:$0xff]  ;;  %v46_v6 = vld [vmem:[#allocation3 + $0x58] sm:$0xff]  ;;  %s107_s27 = sshll.u32 %s182_s26, 4  ;;  %s109_s30 = sshll.u32 %s227_s4, 4  ;;  %s108_s27 = int_to_ptr.vmem [resolvable:$true] %s107_s27  ;;  %s110_s30 = int_to_ptr.hbm [resolvable:$true] %s109_s30 }
   0x8   :  { %v86_v5 = vld [vmem:[%s225_s2] sm:$0xff]  ;;  %v45_v7 = vld [vmem:[#allocation3 + $0x50] sm:$0xff]  ;;  %v44_v8 = vld [vmem:[#allocation3 + $0x48] sm:$0xff] }
   0x9   :  { %52 = vmatpush.msra.mxu0 %v49_v1  ;;  %91 = vperm.xlu0 %124, %v86_v5   ;;  %v43_v9 = vld [vmem:[#allocation3 + $0x40] sm:$0xff]  ;;  %v42_v10 = vld [vmem:[#allocation3 + $0x38] sm:$0xff]  ;;  %v41_v11 = vld [vmem:[#allocation3 + $0x30] sm:$0xff] }
   0xa   :  { %v40_v12 = vld [vmem:[#allocation3 + $0x28] sm:$0xff]  ;;  %v39_v13 = vld [vmem:[#allocation3 + $0x20] sm:$0xff]  ;;  %v38_v14 = vld [vmem:[#allocation3 + $0x18] sm:$0xff] }
   0xb   :  { %53 = vmatpush.msra.mxu0 %v48_v3  ;;  %v37_v15 = vld [vmem:[#allocation3 + $0x10] sm:$0xff]  ;;  %v36_v16 = vld [vmem:[#allocation3 + $0x8] sm:$0xff]  ;;  %v35_v17 = vld [vmem:[#allocation3] sm:$0xff] }
   0xc   :  { %v34_v18 = vld [vmem:[%s223_s0] sm:$0xff] }
   0xd   :  { %54 = vmatpush.msra.mxu0 %v47_v4  ;;  %v125_v22 = vld [vmem:[%s226_s3] ss:$0 sm:$0xff] }
   0xf   :  { %55 = vmatpush.msra.mxu0 %v46_v6 }
  0x11   :  { %56 = vmatpush.msra.mxu0 %v45_v7 }
  0x13   :  { %57 = vmatpush.msra.mxu0 %v44_v8 }
  0x15   :  { %58 = vmatpush.msra.mxu0 %v43_v9 }
  0x17   :  { %59 = vmatpush.msra.mxu0 %v42_v10 }
  0x19   :  { %60 = vmatpush.msra.mxu0 %v41_v11 }
  0x1b   :  { %61 = vmatpush.msra.mxu0 %v40_v12 }
  0x1d   :  { %62 = vmatpush.msra.mxu0 %v39_v13 }
  0x1f   :  { %63 = vmatpush.msra.mxu0 %v38_v14 }
  0x21   :  { %64 = vmatpush.msra.mxu0 %v37_v15 }
  0x23   :  { %65 = vmatpush.msra.mxu0 %v36_v16 }
  0x25   :  { %66 = vmatpush.msra.mxu0 %v35_v17 }
  0x26   :  { %67 = vmatmul.f32.vlgmr.msra.gmra.mxu0 %v34_v18 }
  0x7b   :  { %v92_v20 = vpop.permute.xlu0 %91 }
  0xa3   :  { %v68_v19 = vpop.f32.mrf.mxu0 }
  0xa4   :  { %v88_v21 = vmul.f32 2.0, %v68_v19 }
  0xa6   :  { %v94_v23 = vsub.f32 %v92_v20, %v88_v21 }
  0xa8   :  { %v99_v24 = vadd.f32 %v125_v22, %v94_v23 }
  0xaa   :  { %v100_v25 = vmax.f32 %v99_v24, 0.0 }
  0xac   :  { %101 = vst [vmem:[#allocation6] sm:$0xff] %v100_v25 }
  0xad   :  { %112 = dma.vmem_to_hbm [thread:$0]  %s108_s27, 128, %s110_s30, [#allocation5]  }
  0xae   :  { %176 = dma.done.wait [#allocation5], 128  }
  0xaf   :  { %177 = vsyncadd [#allocation5], 4294967168 }
  0xb0   :  { %117 = vsyncpa [#allocation4], 1 }
  0xb1   :  { %118 = vsyncpa [#allocation5], 1 }

</bundles_post_ra>
